<compile_context>
chip_gen: v7x
topology: tpu7x:2x2x1
jax: 0.10.0
libtpu: 0.0.40
codegen_flags: <defaults>
</compile_context>

<pallas_src>
import functools

import jax
import jax.numpy as jnp
from jax.experimental import pallas as pl
from jax.experimental.pallas import tpu as pltpu

ALPHA = 50.0


def _round_up(x, m):
    return ((x + m - 1) // m) * m


def _vmem_capacity_bytes():
    """Physical VMEM per TensorCore, with a conservative (v7x) fallback."""
    try:
        info = pltpu.get_tpu_info()
        cap = int(getattr(info, "vmem_capacity_bytes", 0) or 0)
        if cap > 0:
            return cap
    except Exception:
        pass
    return 64 << 20


def _pick_spatial_tile(S, bytes_per_row, budget):
    """Largest tile over the sublane-chunk axis whose working set fits budget.

    The tile must either equal S (full extent is always layout-legal) or be a
    multiple of 8 that divides S exactly, so blocks stay (8k, 128)-aligned and
    no partial block leaks garbage into the reduction.
    """
    if S * bytes_per_row <= budget:
        return S
    best = None
    t = 8
    while t < S:
        if S % t == 0 and t * bytes_per_row <= budget:
            best = t
        t += 8
    if best is not None:
        return best
    return S  # no valid chunking; take the full extent


def _temporal_warping_loss_kernel(tgt_ref, wtgt_ref, out_ref, wout_ref,
                                  msk_ref, part_ref, *, alpha):
    # Frame refs: (B, C, s_tile, L); mask ref: (B, s_tile, L); part: (8, 128).
    f32 = jnp.float32
    tgt = tgt_ref[...].astype(f32)
    wtgt = wtgt_ref[...].astype(f32)

    # _get_non_occlusion_mask: exp(-alpha * (sum over channels of diff)^2).
    # C is a leading (untiled) block axis -> plain vreg adds on the VPU.
    diff = jnp.sum(tgt - wtgt, axis=1)                     # (B, s_tile, L)
    non_occ = jnp.exp(-alpha * diff * diff)                # (B, s_tile, L)

    # L1LossMaskedMean with masked = 1 - mask (broadcast over channels).
    masked = 1.0 - msk_ref[...].astype(f32)                # (B, s_tile, L)
    w = non_occ * masked                                   # (B, s_tile, L)

    out = out_ref[...].astype(f32)
    wout = wout_ref[...].astype(f32)
    # |x*w - y*w| == |x - y| * w since w >= 0 (exp > 0, mask in [0,1]).
    num = jnp.sum(jnp.abs(out - wout) * w[:, None, :, :])
    den = jnp.sum(masked)

    # Single lane-dense partials block per grid step:
    #   sublane 0 -> numerator partial, sublane 1 -> denominator partial.
    rows = jax.lax.broadcasted_iota(jnp.int32, part_ref.shape, 0)
    part_ref[...] = jnp.where(rows == 0, num,
                              jnp.where(rows == 1, den, 0.0))


@functools.partial(jax.jit,
                   static_argnames=("alpha", "lanes", "s_tile", "vmem_limit"))
def _temporal_warping_loss_impl(targets, warped_targets, outputs,
                                warped_outputs, masks, *, alpha, lanes,
                                s_tile, vmem_limit):
    B, T, C, H, W = targets.shape
    Tm1 = T - 1
    S = (H * W) // lanes
    n_chunks = S // s_tile

    # Contiguous (free) trailing-dim reshapes only — no slicing, no upcasting.
    tgt = targets.reshape(B, T, C, S, lanes)
    out = outputs.reshape(B, T, C, S, lanes)
    wtgt = warped_targets.reshape(B, Tm1, C, S, lanes)
    wout = warped_outputs.reshape(B, Tm1, C, S, lanes)
    msk = masks.reshape(B, T, S, lanes)        # size-1 channel dim folded away

    # Frame selection folded into the index_map: t+1 for full-T streams,
    # t for the T-1 warped streams; s indexes the spatial chunk.
    frame_block = (B, None, C, s_tile, lanes)
    frame_next_spec = pl.BlockSpec(frame_block, lambda t, s: (0, t + 1, 0, s, 0))
    frame_warp_spec = pl.BlockSpec(frame_block, lambda t, s: (0, t, 0, s, 0))
    mask_spec = pl.BlockSpec((B, None, s_tile, lanes),
                             lambda t, s: (0, t + 1, s, 0))
    part_spec = pl.BlockSpec((None, None, 8, 128), lambda t, s: (t, s, 0, 0))

    parts = pl.pallas_call(
        functools.partial(_temporal_warping_loss_kernel, alpha=float(alpha)),
        out_shape=jax.ShapeDtypeStruct((Tm1, n_chunks, 8, 128), jnp.float32),
        grid_spec=pltpu.PrefetchScalarGridSpec(
            num_scalar_prefetch=0,
            grid=(Tm1, n_chunks),
            in_specs=[frame_next_spec, frame_warp_spec, frame_next_spec,
                      frame_warp_spec, mask_spec],
            out_specs=part_spec,
        ),
        compiler_params=pltpu.CompilerParams(
            dimension_semantics=("parallel", "parallel"),
            vmem_limit_bytes=vmem_limit),
    )(tgt, wtgt, out, wout, msk)

    # Tiny final reduction + divide in JAX (no serial in-kernel accumulator).
    num = jnp.sum(parts[:, :, 0, 0])
    den = jnp.sum(parts[:, :, 1, 0])
    return num / den


def temporal_warping_loss(targets, warped_targets, outputs, warped_outputs,
                          masks, alpha=ALPHA):
    """targets/outputs: (B,T,C,H,W); warped_*: (B,T-1,C,H,W); masks: (B,T,1,H,W).

    Inputs are consumed in their native dtypes (e.g. bf16 frames, uint8 masks);
    all arithmetic happens in f32 inside the kernel.
    """
    B, T, C, H, W = targets.shape
    HW = H * W

    # Lane-dense trailing layout: spatial -> (S, L), L = 128 whenever possible.
    if HW % 128 == 0:
        lanes, S = 128, HW // 128
    else:
        lanes, S = W, H

    frame_isz = jnp.dtype(targets.dtype).itemsize
    mask_isz = jnp.dtype(masks.dtype).itemsize

    # Per-generation VMEM budget: target ~half of physical VMEM for the
    # double-buffered working set; derive the spatial tile from it.
    phys_vmem = _vmem_capacity_bytes()
    budget = phys_vmem // 2
    # Bytes per unit of the S axis: 4 frame streams + mask, 2 buffers each.
    bytes_per_row = 2 * (4 * B * C * lanes * frame_isz + B * lanes * mask_isz)
    s_tile = _pick_spatial_tile(S, bytes_per_row, budget)

    # Sublane-padding-aware VMEM estimate (+ output double buffer + slack).
    def _pad_rows(rows, itemsize):
        return _round_up(rows, max(8, 32 // max(itemsize, 1)))

    vmem_needed = (2 * (4 * B * C * _pad_rows(s_tile, frame_isz) * lanes * frame_isz
                        + B * _pad_rows(s_tile, mask_isz) * lanes * mask_isz)
                   + 2 * 8 * 128 * 4
                   + (4 << 20))
    vmem_limit = int(min(max(vmem_needed, 32 << 20), phys_vmem - (8 << 20)))

    return _temporal_warping_loss_impl(
        targets, warped_targets, outputs, warped_outputs, masks,
        alpha=float(alpha), lanes=lanes, s_tile=s_tile, vmem_limit=vmem_limit)


def _reference_loss(targets, warped_targets, outputs, warped_outputs, masks,
                    alpha=ALPHA):
    t = targets.astype(jnp.float32)
    wt = warped_targets.astype(jnp.float32)
    o = outputs.astype(jnp.float32)
    wo = warped_outputs.astype(jnp.float32)
    m = masks.astype(jnp.float32)
    diff = jnp.sum(t[:, 1:] - wt, axis=2)                 # (B,T-1,H,W)
    nom = jnp.exp(-alpha * diff ** 2)[:, :, None]         # (B,T-1,1,H,W)
    masked = 1.0 - m[:, 1:]                               # (B,T-1,1,H,W)
    x = o[:, 1:] * nom
    y = wo * nom
    l1 = jnp.sum(jnp.abs(x * masked - y * masked))
    return l1 / jnp.sum(masked)


if __name__ == "__main__":
    B, T, C, H, W = 2, 5, 3, 16, 16
    key = jax.random.PRNGKey(0)
    k1, k2, k3, k4, k5 = jax.random.split(key, 5)

    targets_f = jax.random.normal(k1, (B, T, C, H, W), jnp.float32)
    outputs_f = jax.random.normal(k2, (B, T, C, H, W), jnp.float32)
    # TODO(synk): FlowNet2 inference + warp_optical_flow need an external
    # checkpoint; synthetic "warped" frames stand in for their outputs here.
    warped_targets_f = targets_f[:, 1:] + 0.05 * jax.random.normal(
        k3, (B, T - 1, C, H, W), jnp.float32)
    warped_outputs_f = outputs_f[:, 1:] + 0.05 * jax.random.normal(
        k4, (B, T - 1, C, H, W), jnp.float32)

    # Native dtypes straight into the kernel: bf16 frames, uint8 masks.
    targets = targets_f.astype(jnp.bfloat16)
    outputs = outputs_f.astype(jnp.bfloat16)
    warped_targets = warped_targets_f.astype(jnp.bfloat16)
    warped_outputs = warped_outputs_f.astype(jnp.bfloat16)
    masks = (jax.random.uniform(k5, (B, T, 1, H, W)) < 0.3).astype(jnp.uint8)

    loss = temporal_warping_loss(targets, warped_targets, outputs,
                                 warped_outputs, masks)
    loss = jax.block_until_ready(loss)

    ref = _reference_loss(targets, warped_targets, outputs, warped_outputs,
                          masks)
    assert jnp.allclose(loss, ref, rtol=1e-4, atol=1e-5), (loss, ref)
    print("KERNEL_OK")
</pallas_src>

<mosaic_0001>
module attributes {stable_mosaic.version = 11 : i64} {
  func.func @_temporal_warping_loss_kernel(%arg0: i32, %arg1: i32, %arg2: memref<2x1x3x2x128xbf16, #tpu.memory_space<vmem>>, %arg3: memref<2x1x3x2x128xbf16, #tpu.memory_space<vmem>>, %arg4: memref<2x1x3x2x128xbf16, #tpu.memory_space<vmem>>, %arg5: memref<2x1x3x2x128xbf16, #tpu.memory_space<vmem>>, %arg6: memref<2x1x2x128xi8, #tpu.memory_space<vmem>>, %arg7: memref<1x1x8x128xf32, #tpu.memory_space<vmem>>) attributes {dimension_semantics = [#tpu.dimension_semantics<parallel>, #tpu.dimension_semantics<parallel>], iteration_bounds = array<i64: 4, 1>, scalar_prefetch = 0 : i64, scratch_operands = 0 : i64, tpu.core_type = #tpu.core_type<tc>, window_params = [{transform_indices = @transform_0, window_bounds = array<i64: 2, 1, 3, 2, 128>}, {transform_indices = @transform_1, window_bounds = array<i64: 2, 1, 3, 2, 128>}, {transform_indices = @transform_2, window_bounds = array<i64: 2, 1, 3, 2, 128>}, {transform_indices = @transform_3, window_bounds = array<i64: 2, 1, 3, 2, 128>}, {transform_indices = @transform_4, window_bounds = array<i64: 2, 1, 2, 128>}, {transform_indices = @transform_5, window_bounds = array<i64: 1, 1, 8, 128>}]} {
    %c0 = arith.constant 0 : index
    %c0_0 = arith.constant 0 : index
    %c0_1 = arith.constant 0 : index
    %c0_2 = arith.constant 0 : index
    %c0_3 = arith.constant 0 : index
    %0 = vector.load %arg2[%c0, %c0_0, %c0_1, %c0_2, %c0_3] : memref<2x1x3x2x128xbf16, #tpu.memory_space<vmem>>, vector<2x1x3x2x128xbf16>
    %1 = vector.shape_cast %0 : vector<2x1x3x2x128xbf16> to vector<2x3x2x128xbf16>
    %2 = arith.extf %1 : vector<2x3x2x128xbf16> to vector<2x3x2x128xf32>
    %c0_4 = arith.constant 0 : index
    %c0_5 = arith.constant 0 : index
    %c0_6 = arith.constant 0 : index
    %c0_7 = arith.constant 0 : index
    %c0_8 = arith.constant 0 : index
    %3 = vector.load %arg3[%c0_4, %c0_5, %c0_6, %c0_7, %c0_8] : memref<2x1x3x2x128xbf16, #tpu.memory_space<vmem>>, vector<2x1x3x2x128xbf16>
    %4 = vector.shape_cast %3 : vector<2x1x3x2x128xbf16> to vector<2x3x2x128xbf16>
    %5 = arith.extf %4 : vector<2x3x2x128xbf16> to vector<2x3x2x128xf32>
    %6 = arith.subf %2, %5 : vector<2x3x2x128xf32>
    %cst = arith.constant dense<0.000000e+00> : vector<2x2x128xf32>
    %7 = vector.multi_reduction <add>, %6, %cst [1] : vector<2x3x2x128xf32> to vector<2x2x128xf32>
    %cst_9 = arith.constant -5.000000e+01 : f32
    %8 = vector.broadcast %cst_9 : f32 to vector<2x2x128xf32>
    %9 = arith.mulf %8, %7 : vector<2x2x128xf32>
    %10 = arith.mulf %9, %7 : vector<2x2x128xf32>
    %11 = math.exp %10 : vector<2x2x128xf32>
    %c0_10 = arith.constant 0 : index
    %c0_11 = arith.constant 0 : index
    %c0_12 = arith.constant 0 : index
    %c0_13 = arith.constant 0 : index
    %12 = vector.load %arg6[%c0_10, %c0_11, %c0_12, %c0_13] : memref<2x1x2x128xi8, #tpu.memory_space<vmem>>, vector<2x1x2x128xi8>
    %13 = vector.shape_cast %12 : vector<2x1x2x128xi8> to vector<2x2x128xi8>
    %14 = arith.uitofp %13 : vector<2x2x128xi8> to vector<2x2x128xf32>
    %cst_14 = arith.constant 1.000000e+00 : f32
    %15 = vector.broadcast %cst_14 : f32 to vector<2x2x128xf32>
    %16 = arith.subf %15, %14 : vector<2x2x128xf32>
    %17 = arith.mulf %11, %16 : vector<2x2x128xf32>
    %c0_15 = arith.constant 0 : index
    %c0_16 = arith.constant 0 : index
    %c0_17 = arith.constant 0 : index
    %c0_18 = arith.constant 0 : index
    %c0_19 = arith.constant 0 : index
    %18 = vector.load %arg4[%c0_15, %c0_16, %c0_17, %c0_18, %c0_19] : memref<2x1x3x2x128xbf16, #tpu.memory_space<vmem>>, vector<2x1x3x2x128xbf16>
    %19 = vector.shape_cast %18 : vector<2x1x3x2x128xbf16> to vector<2x3x2x128xbf16>
    %20 = arith.extf %19 : vector<2x3x2x128xbf16> to vector<2x3x2x128xf32>
    %c0_20 = arith.constant 0 : index
    %c0_21 = arith.constant 0 : index
    %c0_22 = arith.constant 0 : index
    %c0_23 = arith.constant 0 : index
    %c0_24 = arith.constant 0 : index
    %21 = vector.load %arg5[%c0_20, %c0_21, %c0_22, %c0_23, %c0_24] : memref<2x1x3x2x128xbf16, #tpu.memory_space<vmem>>, vector<2x1x3x2x128xbf16>
    %22 = vector.shape_cast %21 : vector<2x1x3x2x128xbf16> to vector<2x3x2x128xbf16>
    %23 = arith.extf %22 : vector<2x3x2x128xbf16> to vector<2x3x2x128xf32>
    %24 = arith.subf %20, %23 : vector<2x3x2x128xf32>
    %25 = math.absf %24 : vector<2x3x2x128xf32>
    %26 = vector.shape_cast %17 : vector<2x2x128xf32> to vector<2x1x2x128xf32>
    %27 = vector.broadcast %26 : vector<2x1x2x128xf32> to vector<2x3x2x128xf32>
    %28 = arith.mulf %25, %27 : vector<2x3x2x128xf32>
    %29 = vector.shape_cast %28 : vector<2x3x2x128xf32> to vector<1x2x3x2x128xf32>
    %cst_25 = arith.constant dense<0.000000e+00> : vector<1xf32>
    %30 = vector.multi_reduction <add>, %29, %cst_25 [1, 2, 3, 4] : vector<1x2x3x2x128xf32> to vector<1xf32>
    %31 = vector.shape_cast %30 : vector<1xf32> to vector<1x1x1x1x1xf32>
    %32 = vector.extract %31[0, 0, 0, 0, 0] : f32 from vector<1x1x1x1x1xf32>
    %33 = vector.shape_cast %16 : vector<2x2x128xf32> to vector<1x2x2x128xf32>
    %cst_26 = arith.constant dense<0.000000e+00> : vector<1xf32>
    %34 = vector.multi_reduction <add>, %33, %cst_26 [1, 2, 3] : vector<1x2x2x128xf32> to vector<1xf32>
    %35 = vector.shape_cast %34 : vector<1xf32> to vector<1x1x1x1xf32>
    %36 = vector.extract %35[0, 0, 0, 0] : f32 from vector<1x1x1x1xf32>
    %37 = tpu.iota {dimensions = array<i32: 0>} : vector<8x128xi32>
    %c0_i32 = arith.constant 0 : i32
    %38 = vector.broadcast %c0_i32 : i32 to vector<8x128xi32>
    %39 = arith.cmpi eq, %37, %38 : vector<8x128xi32>
    %c1_i32 = arith.constant 1 : i32
    %40 = vector.broadcast %c1_i32 : i32 to vector<8x128xi32>
    %41 = arith.cmpi eq, %37, %40 : vector<8x128xi32>
    %cst_27 = arith.constant 0.000000e+00 : f32
    %42 = vector.broadcast %36 : f32 to vector<8x128xf32>
    %43 = vector.broadcast %cst_27 : f32 to vector<8x128xf32>
    %44 = arith.select %41, %42, %43 : vector<8x128xi1>, vector<8x128xf32>
    %45 = vector.broadcast %32 : f32 to vector<8x128xf32>
    %46 = arith.select %39, %45, %44 : vector<8x128xi1>, vector<8x128xf32>
    %c0_28 = arith.constant 0 : index
    %c0_29 = arith.constant 0 : index
    %c0_30 = arith.constant 0 : index
    %c0_31 = arith.constant 0 : index
    %47 = vector.load %arg7[%c0_28, %c0_29, %c0_30, %c0_31] : memref<1x1x8x128xf32, #tpu.memory_space<vmem>>, vector<1x1x8x128xf32>
    %48 = vector.shape_cast %47 : vector<1x1x8x128xf32> to vector<8x128xf32>
    %49 = vector.shape_cast %46 : vector<8x128xf32> to vector<1x1x8x128xf32>
    tpu.vector_store %arg7[%c0_28, %c0_29, %c0_30, %c0_31], %49 {strides = array<i32>} : memref<1x1x8x128xf32, #tpu.memory_space<vmem>>, vector<1x1x8x128xf32>,
    return
  }
  func.func @transform_0(%arg0: i32, %arg1: i32) -> (i32, i32, i32, i32, i32) {
    %c1_i32 = arith.constant 1 : i32
    %0 = arith.addi %arg0, %c1_i32 : i32
    %c0_i32 = arith.constant 0 : i32
    %c0_i32_0 = arith.constant 0 : i32
    %c0_i32_1 = arith.constant 0 : i32
    %c0_i32_2 = arith.constant 0 : i32
    return %c0_i32, %0, %c0_i32_0, %arg1, %c0_i32_1 : i32, i32, i32, i32, i32
  }
  func.func @transform_1(%arg0: i32, %arg1: i32) -> (i32, i32, i32, i32, i32) {
    %c0_i32 = arith.constant 0 : i32
    %c0_i32_0 = arith.constant 0 : i32
    %c0_i32_1 = arith.constant 0 : i32
    %c0_i32_2 = arith.constant 0 : i32
    return %c0_i32, %arg0, %c0_i32_0, %arg1, %c0_i32_1 : i32, i32, i32, i32, i32
  }
  func.func @transform_2(%arg0: i32, %arg1: i32) -> (i32, i32, i32, i32, i32) {
    %c1_i32 = arith.constant 1 : i32
    %0 = arith.addi %arg0, %c1_i32 : i32
    %c0_i32 = arith.constant 0 : i32
    %c0_i32_0 = arith.constant 0 : i32
    %c0_i32_1 = arith.constant 0 : i32
    %c0_i32_2 = arith.constant 0 : i32
    return %c0_i32, %0, %c0_i32_0, %arg1, %c0_i32_1 : i32, i32, i32, i32, i32
  }
  func.func @transform_3(%arg0: i32, %arg1: i32) -> (i32, i32, i32, i32, i32) {
    %c0_i32 = arith.constant 0 : i32
    %c0_i32_0 = arith.constant 0 : i32
    %c0_i32_1 = arith.constant 0 : i32
    %c0_i32_2 = arith.constant 0 : i32
    return %c0_i32, %arg0, %c0_i32_0, %arg1, %c0_i32_1 : i32, i32, i32, i32, i32
  }
  func.func @transform_4(%arg0: i32, %arg1: i32) -> (i32, i32, i32, i32) {
    %c1_i32 = arith.constant 1 : i32
    %0 = arith.addi %arg0, %c1_i32 : i32
    %c0_i32 = arith.constant 0 : i32
    %c0_i32_0 = arith.constant 0 : i32
    %c0_i32_1 = arith.constant 0 : i32
    return %c0_i32, %0, %arg1, %c0_i32_0 : i32, i32, i32, i32
  }
  func.func @transform_5(%arg0: i32, %arg1: i32) -> (i32, i32, i32, i32) {
    %c0_i32 = arith.constant 0 : i32
    %c0_i32_0 = arith.constant 0 : i32
    %c0_i32_1 = arith.constant 0 : i32
    return %arg0, %arg1, %c0_i32, %c0_i32_0 : i32, i32, i32, i32
  }
}

</mosaic_0001>

<bundles_post_ra>
// kernel: _temporal_warping_loss_impl.1
= control target key start
LH: loop header
LB: loop body
LE: loop exit
PB: predicated region body
PF: predicated region fallthrough
CT: control target
= control target key end

     0   :  { %s1008_s18 = smov 0   ;;  %s1010_s19 = smov 0   ;;  %s1161_s0 = inlined_call_operand.vmem [shape: bf16[2,5,3,2,128], index: 0, kind: input, shape index: {}]   ;;  %s1162_s1 = inlined_call_operand.vmem [shape: bf16[2,4,3,2,128], index: 1, kind: input, shape index: {}]   ;;  %s1163_s2 = inlined_call_operand.vmem [shape: bf16[2,5,3,2,128], index: 2, kind: input, shape index: {}]   ;;  %s1164_s3 = inlined_call_operand.vmem [shape: bf16[2,4,3,2,128], index: 3, kind: input, shape index: {}]   ;;  %s1165_s4 = inlined_call_operand.vmem [shape: u8[2,5,2,128], index: 4, kind: input, shape index: {}]   ;;  %s1166_s5 = inlined_call_operand.vmem [shape: f32[4,1,8,128], index: 5, kind: output, shape index: {}]  }
   0x1   :  { %s1012_s20 = smov 0   ;;  %s1014_s21 = smov 0  }
   0x2   :  { %s1016_s22 = smov 0   ;;  %s1018_s23 = smov 0  }
   0x3   :  { %s1020_s24 = smov 0  }
   0x4 LB: > { %s27_s25 = sadd.s32 1, %s972_s23  ;;  %s38_s26 = sadd.s32 1, %s964_s21  ;;  %s976_s24 = sphi %s1020_s24, %s15_s24   ;;  %s972_s23 = sphi %s1018_s23, %s1174_s23   ;;  %s968_s22 = sphi %s1016_s22, %s1173_s22   ;;  %s964_s21 = sphi %s1014_s21, %s1172_s21   ;;  %s960_s20 = sphi %s1012_s20, %s1171_s20   ;;  %s956_s19 = sphi %s1010_s19, %s1170_s19   ;;  %s952_s18 = sphi %s1008_s18, %s1169_s18  }
   0x5   : > { %p29_p0 = scmp.ge.s32.totalorder %s27_s25, 4  ;;  %p45_p1 = scmp.ne.s32.totalorder %s964_s21, %s960_s20 }
   0x6   : > { %p46_p2 = scmp.eq.s32.totalorder %s976_s24, 0  ;;  %s66_s27 = sadd.s32 1, %s956_s19 }
   0x7   : > { %s1049_s28 = scalar_select %p29_p0, 0, %s27_s25  }
   0x8   : > { %p1051_p3 = por %p46_p2, %p45_p1  ;;  %p73_p4 = scmp.ne.s32.totalorder %s956_s19, %s952_s18 }
   0x9   : > { %s32_s30 = sadd.s32 1, %s1049_s28  ;;  %s61_s6 = ssub.s32 %s972_s23, %s1049_s28 }
   0xa   : > { %s33_s7 = ssub.s32 %s27_s25, %s32_s30  ;;  %p64_p5 = scmp.eq.s32.totalorder %s61_s6, 0 }
   0xb   : > { %p36_p6 = scmp.eq.s32.totalorder %s33_s7, 0  ;;  %p1060_p7 = por %p73_p4, %p46_p2 }
   0xc   : > { %s1065_s9 = scalar_select %p64_p5, %s956_s19, %s66_s27  }
   0xd   : > { %s1068_s10 = scalar_select %p36_p6, %s964_s21, %s38_s26  }
   0xe   : > { %p837_p8 = scmp.ge.s32.totalorder %s976_s24, 4 }
  0x10   : > { %215 = sbr.rel (%p837_p8) target bundleno = 58 (0x3a), region = 16 }
  0x17   : > { %218 = sbr.rel (!%p1051_p3) target bundleno = 30 (0x1e), region = 20  ;;  %s220_s11 = sand.u32 (%p1051_p3), 1, %s964_s21  }
  0x18   : > { %s705_s12 = smul.u32 (%p1051_p3), 3, %s972_s23 }
  0x19   : > { %s850_s13 = smul.u32 (%p1051_p3), 6, %s220_s11 }
  0x1a   : > { %s707_s16 = scalar_lea.vmem (%p1051_p3), %s1161_s0, %s705_s12 }
  0x1b   : > { %v838_v0 = vld [vmem:[%s707_s16 + $0x3] sm:$0x7] (%p1051_p3)  ;;  %v839_v1 = vld [vmem:[%s707_s16 + $0x12] sm:$0x7] (%p1051_p3)  ;;  %s222_s17 = scalar_lea.vmem (%p1051_p3), [#allocation2], %s850_s13 }
  0x1c   : > { %243 = vst [vmem:[%s222_s17] sm:$0x7] (%p1051_p3), %v838_v0  ;;  %245 = vst [vmem:[%s222_s17 + $0x3] sm:$0x7] (%p1051_p3), %v839_v1 }
  0x1e PF: > { %264 = sbr.rel (!%p1060_p7) target bundleno = 37 (0x25), region = 54  ;;  %s266_s25 = sand.u32 (%p1060_p7), 1, %s956_s19  }
  0x1f   : > { %s852_s26 = smul.u32 (%p1060_p7), 3, %s972_s23 }
  0x20   : > { %s851_s27 = smul.u32 (%p1060_p7), 6, %s266_s25 }
  0x21   : > { %s271_s7 = scalar_lea.vmem (%p1060_p7), %s1162_s1, %s852_s26 }
  0x22   : > { %v287_v2 = vld [vmem:[%s271_s7] sm:$0x7] (%p1060_p7)  ;;  %v289_v3 = vld [vmem:[%s271_s7 + $0xc] sm:$0x7] (%p1060_p7)  ;;  %s268_s11 = scalar_lea.vmem (%p1060_p7), [#allocation3], %s851_s27 }
  0x23   : > { %288 = vst [vmem:[%s268_s11] sm:$0x7] (%p1060_p7), %v287_v2  ;;  %290 = vst [vmem:[%s268_s11 + $0x3] sm:$0x7] (%p1060_p7), %v289_v3 }
  0x25 PF: > { %309 = sbr.rel (!%p1051_p3) target bundleno = 44 (0x2c), region = 88  ;;  %s311_s12 = sand.u32 (%p1051_p3), 1, %s964_s21  }
  0x26   : > { %s716_s13 = smul.u32 (%p1051_p3), 3, %s972_s23 }
  0x27   : > { %s853_s14 = smul.u32 (%p1051_p3), 6, %s311_s12 }
  0x28   : > { %s718_s17 = scalar_lea.vmem (%p1051_p3), %s1163_s2, %s716_s13 }
  0x29   : > { %v840_v4 = vld [vmem:[%s718_s17 + $0x3] sm:$0x7] (%p1051_p3)  ;;  %v841_v5 = vld [vmem:[%s718_s17 + $0x12] sm:$0x7] (%p1051_p3)  ;;  %s313_s25 = scalar_lea.vmem (%p1051_p3), [#allocation4], %s853_s14 }
  0x2a   : > { %334 = vst [vmem:[%s313_s25] sm:$0x7] (%p1051_p3), %v840_v4  ;;  %336 = vst [vmem:[%s313_s25 + $0x3] sm:$0x7] (%p1051_p3), %v841_v5 }
  0x2c PF: > { %355 = sbr.rel (!%p1060_p7) target bundleno = 51 (0x33), region = 122  ;;  %s357_s26 = sand.u32 (%p1060_p7), 1, %s956_s19  }
  0x2d   : > { %s855_s27 = smul.u32 (%p1060_p7), 3, %s972_s23 }
  0x2e   : > { %s854_s30 = smul.u32 (%p1060_p7), 6, %s357_s26 }
  0x2f   : > { %s362_s11 = scalar_lea.vmem (%p1060_p7), %s1164_s3, %s855_s27 }
  0x30   : > { %v378_v6 = vld [vmem:[%s362_s11] sm:$0x7] (%p1060_p7)  ;;  %v380_v7 = vld [vmem:[%s362_s11 + $0xc] sm:$0x7] (%p1060_p7)  ;;  %s359_s12 = scalar_lea.vmem (%p1060_p7), [#allocation5], %s854_s30 }
  0x31   : > { %379 = vst [vmem:[%s359_s12] sm:$0x7] (%p1060_p7), %v378_v6  ;;  %381 = vst [vmem:[%s359_s12 + $0x3] sm:$0x7] (%p1060_p7), %v380_v7 }
  0x33 PF: > { %400 = sbr.rel (!%p1051_p3) target bundleno = 58 (0x3a), region = 156  ;;  %s402_s8 = sand.u32 (%p1051_p3), 1, %s964_s21  }
  0x34   : > { %s728_s15 = scalar_lea.vmem (%p1051_p3), %s1165_s4, %s972_s23  ;;  %s842_s16 = sshll.u32 (%p1051_p3), %s402_s8, 1 }
  0x35   : > { %v843_v8 = vld [vmem:[%s728_s15 + $0x1] sm:$0x1] (%p1051_p3)  ;;  %v844_v9 = vld [vmem:[%s728_s15 + $0x6] sm:$0x1] (%p1051_p3)  ;;  %s404_s17 = scalar_lea.vmem (%p1051_p3), [#allocation6], %s842_s16 }
  0x36   : > { %424 = vst [vmem:[%s404_s17] sm:$0x1] (%p1051_p3), %v843_v8  ;;  %426 = vst [vmem:[%s404_s17 + $0x1] sm:$0x1] (%p1051_p3), %v844_v9 }
  0x3a PF: > { %p845_p9 = scmp.ge.s32.totalorder %s976_s24, 1  ;;  %p444_p10 = scmp.lt.s32.totalorder %s976_s24, 5 }
  0x3c   : > { %p445_p11 = pnand %p845_p9, %p444_p10 }
  0x3d   : > { %s451_s29 = sand.u32 (!%p445_p11), 1, %s960_s20   ;;  %s458_s25 = sand.u32 (!%p445_p11), 1, %s952_s18   ;;  %vm564_vm0 = vcmask (!%p445_p11), 1041408  }
  0x3e   : > { %448 = sbr.rel (%p445_p11) target bundleno = 323 (0x143), region = 190  ;;  %s1114_s30 = sshll.u32 (!%p445_p11), %s451_s29, 1 }
  0x3f   : > { %s1110_s26 = smul.u32 (!%p445_p11), 6, %s451_s29  ;;  %s481_s20 = scalar_lea.vmem (!%p445_p11), [#allocation6], %s1114_s30 }
  0x40   : > { %s1112_s27 = smul.u32 (!%p445_p11), 6, %s458_s25  ;;  %v583_v42 = vld [vmem:[%s481_s20] sm:$0x1] (!%p445_p11)  ;;  %v584_v43 = vld [vmem:[%s481_s20 + $0x1] sm:$0x1] (!%p445_p11)  ;;  %p527_p12 = scmp.lt.s32.totalorder (!%p445_p11), %s968_s22, 3 }
  0x41   : > { %s453_s6 = scalar_lea.vmem (!%p445_p11), [#allocation2], %s1110_s26  ;;  %v585_v51 = vunpack.c.0.s8 (!%p445_p11), %v583_v42  ;;  %v586_v52 = vunpack.c.0.s8 (!%p445_p11), %v584_v43  ;;  %s467_s7 = scalar_lea.vmem (!%p445_p11), [#allocation4], %s1110_s26 }
  0x42   : > { %v534_v10 = vld [vmem:[%s453_s6] sm:$0x1] (!%p445_p11)  ;;  %v535_v11 = vld [vmem:[%s453_s6 + $0x1] sm:$0x1] (!%p445_p11)  ;;  %v536_v12 = vld [vmem:[%s453_s6 + $0x2] sm:$0x1] (!%p445_p11) }
  0x43   : > { %v537_v13 = vld [vmem:[%s453_s6 + $0x3] sm:$0x1] (!%p445_p11)  ;;  %v538_v14 = vld [vmem:[%s453_s6 + $0x4] sm:$0x1] (!%p445_p11)  ;;  %v540_v15 = vunpack.c.l.bf16 (!%p445_p11), %v534_v10  ;;  %v541_v16 = vunpack.c.l.bf16 (!%p445_p11), %v535_v11  ;;  %v539_v17 = vld [vmem:[%s453_s6 + $0x5] sm:$0x1] (!%p445_p11)  ;;  %v542_v18 = vunpack.c.l.bf16 (!%p445_p11), %v536_v12 }
  0x44   : > { %v543_v19 = vunpack.c.l.bf16 (!%p445_p11), %v537_v13  ;;  %v544_v20 = vunpack.c.l.bf16 (!%p445_p11), %v538_v14  ;;  %s460_s18 = scalar_lea.vmem (!%p445_p11), [#allocation3], %s1112_s27  ;;  %v545_v23 = vunpack.c.l.bf16 (!%p445_p11), %v539_v17  ;;  %v587_v57 = vand.u32 (!%p445_p11), 255, %v585_v51  ;;  %v595_v59 = vld [vmem:[%s467_s7] sm:$0x1] (!%p445_p11)  ;;  %v596_v61 = vld [vmem:[%s467_s7 + $0x1] sm:$0x1] (!%p445_p11) }
  0x45   : > { %v546_v21 = vld [vmem:[%s460_s18] sm:$0x1]  ;;  %v547_v22 = vld [vmem:[%s460_s18 + $0x1] sm:$0x1]  ;;  %v548_v24 = vld [vmem:[%s460_s18 + $0x2] sm:$0x1]  ;;  %v601_v7 = vunpack.c.l.bf16 %v595_v59  ;;  %v602_v8 = vunpack.c.l.bf16 %v596_v61 }
  0x46   : > { %v549_v25 = vld [vmem:[%s460_s18 + $0x3] sm:$0x1]  ;;  %v550_v26 = vld [vmem:[%s460_s18 + $0x4] sm:$0x1]  ;;  %v552_v27 = vunpack.c.l.bf16 %v546_v21  ;;  %v553_v28 = vunpack.c.l.bf16 %v547_v22  ;;  %v551_v29 = vld [vmem:[%s460_s18 + $0x5] sm:$0x1]  ;;  %v554_v30 = vunpack.c.l.bf16 %v548_v24 }
  0x47   : > { %v555_v31 = vunpack.c.l.bf16 %v549_v25  ;;  %v556_v32 = vunpack.c.l.bf16 %v550_v26  ;;  %v557_v33 = vunpack.c.l.bf16 %v551_v29  ;;  %v588_v58 = vand.u32 255, %v586_v52  ;;  %v597_v62 = vld [vmem:[%s467_s7 + $0x2] sm:$0x1]  ;;  %s474_s11 = scalar_lea.vmem [#allocation5], %s1112_s27  ;;  %v598_v4 = vld [vmem:[%s467_s7 + $0x3] sm:$0x1] }
  0x48   : > { %v558_v34 = vsub.f32 %v540_v15, %v552_v27  ;;  %v559_v35 = vsub.f32 %v541_v16, %v553_v28  ;;  %v560_v36 = vsub.f32 %v542_v18, %v554_v30  ;;  %v607_v63 = vld [vmem:[%s474_s11] sm:$0x1]  ;;  %v608_v1 = vld [vmem:[%s474_s11 + $0x1] sm:$0x1]  ;;  %v609_v2 = vld [vmem:[%s474_s11 + $0x2] sm:$0x1]  ;;  %v603_v9 = vunpack.c.l.bf16 %v597_v62 }
  0x49   : > { %v561_v37 = vsub.f32 %v543_v19, %v555_v31  ;;  %v562_v38 = vsub.f32 %v544_v20, %v556_v32  ;;  %v563_v39 = vsub.f32 %v545_v23, %v557_v33  ;;  %v610_v5 = vld [vmem:[%s474_s11 + $0x3] sm:$0x1]  ;;  %v599_v6 = vld [vmem:[%s467_s7 + $0x4] sm:$0x1]  ;;  %v611_v10 = vld [vmem:[%s474_s11 + $0x4] sm:$0x1]  ;;  %v613_v12 = vunpack.c.l.bf16 %v607_v63 }
  0x4a   : > { %v565_v40 = vsel %vm564_vm0, %v558_v34, 0.0  ;;  %v566_v41 = vsel %vm564_vm0, %v559_v35, 0.0  ;;  %v568_v45 = vsel %vm564_vm0, %v560_v36, 0.0  ;;  %v600_v11 = vld [vmem:[%s467_s7 + $0x5] sm:$0x1]  ;;  %v614_v13 = vunpack.c.l.bf16 %v608_v1  ;;  %s1176_s22 = smov (!%p527_p12, %s968_s22), 3 }
  0x4b   : > { %v567_v44 = vadd.f32 %v566_v41, %v565_v40  ;;  %v570_v46 = vsel %vm564_vm0, %v561_v37, 0.0  ;;  %v571_v47 = vsel %vm564_vm0, %v562_v38, 0.0  ;;  %v573_v49 = vsel %vm564_vm0, %v563_v39, 0.0  ;;  %v612_v16 = vld [vmem:[%s474_s11 + $0x5] sm:$0x1]  ;;  %s847_s12 = sshll.u32 %s1176_s22, 3 }
  0x4c   : > { %v572_v48 = vadd.f32 %v571_v47, %v570_v46  ;;  %v615_v14 = vunpack.c.l.bf16 %v609_v2  ;;  %v604_v15 = vunpack.c.l.bf16 %v598_v4  ;;  %v616_v17 = vunpack.c.l.bf16 %v610_v5  ;;  %s533_s16 = scalar_lea.vmem %s1166_s5, %s847_s12 }
  0x4d   : > { %v569_v50 = vadd.f32 %v568_v45, %v567_v44  ;;  %v589_v18 = vcvt.s32.f32 %v587_v57  ;;  %v605_v19 = vunpack.c.l.bf16 %v599_v6  ;;  %v617_v20 = vunpack.c.l.bf16 %v611_v10 }
  0x4e   : > { %v574_v53 = vadd.f32 %v573_v49, %v572_v48  ;;  %v590_v21 = vcvt.s32.f32 %v588_v58  ;;  %v606_v22 = vunpack.c.l.bf16 %v600_v11  ;;  %v618_v23 = vunpack.c.l.bf16 %v612_v16 }
  0x4f   : > { %v575_v54 = vmul.f32 -50.0, %v569_v50  ;;  %v619_v24 = vsub.f32 %v601_v7, %v613_v12  ;;  %v620_v25 = vsub.f32 %v602_v8, %v614_v13  ;;  %v621_v26 = vsub.f32 %v603_v9, %v615_v14 }
  0x50   : > { %v576_v55 = vmul.f32 -50.0, %v574_v53  ;;  %v622_v27 = vsub.f32 %v604_v15, %v616_v17  ;;  %v591_v28 = vsub.f32 1.0, %v589_v18  ;;  %v623_v29 = vsub.f32 %v605_v19, %v617_v20 }
  0x51   : > { %v577_v56 = vmul.f32 %v575_v54, %v569_v50  ;;  %v592_v30 = vsub.f32 1.0, %v590_v21  ;;  %v624_v31 = vsub.f32 %v606_v22, %v618_v23  ;;  %v625_v32 = vand.u32 2147483647, %v619_v24 }
  0x52   : > { %v578_v60 = vmul.f32 %v576_v55, %v574_v53  ;;  %v626_v33 = vand.u32 2147483647, %v620_v25  ;;  %v627_v34 = vand.u32 2147483647, %v621_v26  ;;  %v628_v36 = vand.u32 2147483647, %v622_v27 }
  0x53   : > { %v579_v0 = vmul.f32 1.442695, %v577_v56  ;;  %v629_v39 = vand.u32 2147483647, %v623_v29  ;;  %v630_v41 = vand.u32 2147483647, %v624_v31  ;;  %v669_v12 = vlaneseq }
  0x54   : > { %v581_v3 = vmul.f32 1.442695, %v578_v60  ;;  %v657_v58 = vsel %vm564_vm0, %v591_v28, 0.0  ;;  %v658_v59 = vsel %vm564_vm0, %v592_v30, 0.0 }
  0x55   : > { %918 = vpow2.f32 %v579_v0  ;;  %v659_v61 = vadd.f32 %v658_v59, %v657_v58  ;;  %v670_v13 = vshrl.u32 %v669_v12, 7 }
  0x56   : > { %920 = vpow2.f32 %v581_v3 }
  0x57   : > { %vm672_vm1 = vcmp.eq.s32.totalorder %v670_v13, 1  ;;  %vm671_vm2 = vcmp.eq.s32.totalorder %v670_v13, 0 }
  0x5f   : > { %v919_v35 = vpop.eup %918 }
  0x60   : > { %v921_v37 = vpop.eup %920  ;;  %v593_v38 = vmul.f32 %v919_v35, %v591_v28 }
  0x61   : > { %v594_v40 = vmul.f32 %v921_v37, %v592_v30 }
  0x62   : > { %v631_v42 = vmul.f32 %v625_v32, %v593_v38  ;;  %v632_v43 = vmul.f32 %v626_v33, %v593_v38  ;;  %v633_v44 = vmul.f32 %v627_v34, %v593_v38 }
  0x63   : > { %v634_v45 = vmul.f32 %v628_v36, %v594_v40  ;;  %v635_v46 = vmul.f32 %v629_v39, %v594_v40  ;;  %v636_v51 = vmul.f32 %v630_v41, %v594_v40 }
  0x64   : > { %v637_v47 = vsel %vm564_vm0, %v631_v42, 0.0  ;;  %v638_v48 = vsel %vm564_vm0, %v632_v43, 0.0  ;;  %v640_v49 = vsel %vm564_vm0, %v633_v44, 0.0 }
  0x65   : > { %v639_v50 = vadd.f32 %v638_v48, %v637_v47  ;;  %v642_v52 = vsel %vm564_vm0, %v634_v45, 0.0  ;;  %v644_v54 = vsel %vm564_vm0, %v635_v46, 0.0  ;;  %v646_v56 = vsel %vm564_vm0, %v636_v51, 0.0 }
  0x67   : > { %v641_v53 = vadd.f32 %v640_v49, %v639_v50 }
  0x69   : > { %v643_v55 = vadd.f32 %v642_v52, %v641_v53 }
  0x6b   : > { %v645_v57 = vadd.f32 %v644_v54, %v643_v55 }
  0x6d   : > { %v647_v60 = vadd.f32 %v646_v56, %v645_v57 }
  0x6f   : > { %648 = vadd.xlane.f32.xlu0 %v647_v60 }
  0x73   : > { %660 = vadd.xlane.f32.xlu0 %v659_v61 }
  0xfc   : > { %v649_v62 = vpop.xlane.xlu0 %648 }
  0xfd   : > { %v650_v63 = vrot.slane %v649_v62, 4 }
  0xff   : > { %v651_v0 = vadd.f32 %v650_v63, %v649_v62 }
 0x100   : > { %v661_v1 = vpop.xlane.xlu0 %660 }
 0x101   : > { %v652_v2 = vrot.slane %v651_v0, 2  ;;  %v662_v3 = vrot.slane %v661_v1, 4 }
 0x103   : > { %v663_v4 = vadd.f32 %v662_v3, %v661_v1  ;;  %v653_v5 = vadd.f32 %v652_v2, %v651_v0 }
 0x105   : > { %v664_v6 = vrot.slane %v663_v4, 2  ;;  %v654_v7 = vrot.slane %v653_v5, 1 }
 0x107   : > { %v665_v8 = vadd.f32 %v664_v6, %v663_v4  ;;  %v655_v9 = vadd.f32 %v654_v7, %v653_v5 }
 0x109   : > { %858 = vpush %v655_v9  ;;  %v666_v10 = vrot.slane %v665_v8, 1 }
 0x10b   : > { %v667_v11 = vadd.f32 %v666_v10, %v665_v8 }
 0x10d   : > { %860 = vpush %v667_v11 }
 0x13a   : > { %s859_s8 = spop %858 }
 0x13b   : > { %v675_v15 = vstv %s859_s8 }
 0x13e   : > { %s861_s13 = spop %860 }
 0x13f   : > { %v673_v14 = vstv %s861_s13 }
 0x140   : > { %v674_v16 = vsel %vm672_vm1, %v673_v14, 0.0 }
 0x141   : > { %v676_v17 = vsel %vm671_vm2, %v675_v15, %v674_v16 }
 0x142   : > { %677 = vst [vmem:[%s533_s16] sm:$0xff] %v676_v17 }
 0x143 PF: > { %s15_s24 = sadd.s32 1, %s976_s24   ;;  %s1169_s18 = smov %s956_s19 }
 0x144   : > { %p12_p13 = scmp.ge.s32.totalorder %s15_s24, 6   ;;  %s1170_s19 = smov %s1065_s9 }
 0x145   : > { %s1171_s20 = smov %s964_s21  ;;  %s1172_s21 = smov %s1068_s10 }
 0x146   : > { %s1173_s22 = smov %s972_s23  ;;  %s1174_s23 = smov %s1049_s28 }
 0x147   :  { %14 = sbr.rel (!%p12_p13) target bundleno = 4 (0x4), region = 277 }

</bundles_post_ra>
